<compile_context>
chip_gen: v7x
topology: tpu7x:2x2x1
jax: 0.10.0
libtpu: 0.0.40
codegen_flags: <defaults>
</compile_context>

<pallas_src>
import functools

import jax
import jax.numpy as jnp
from jax.experimental import pallas as pl
from jax.experimental.pallas import tpu as pltpu

EPS = 1e-5  # PyTorch BatchNorm1d default


def _stats_kernel(x_ref, gamma_ref, beta_ref, scale_ref, shift_ref,
                  sum_ref, sq_ref, *, rows, tile_rows, eps):
    """Pass 1: accumulate per-channel sum / sum-of-squares; finalize scale/shift."""
    i = pl.program_id(0)
    n_tiles = pl.num_programs(0)

    @pl.when(i == 0)
    def _init():
        sum_ref[...] = jnp.zeros_like(sum_ref)
        sq_ref[...] = jnp.zeros_like(sq_ref)

    x = x_ref[...].astype(jnp.float32)  # (TR, Hp)

    # Mask out rows past the true row count (only needed for a partial tile).
    if rows % tile_rows != 0:
        row_idx = (jax.lax.broadcasted_iota(jnp.int32, (tile_rows, 1), 0)
                   + i * tile_rows)
        x = jnp.where(row_idx < rows, x, jnp.float32(0.0))

    # Per-channel partial reductions on the MXU (keeps VPU/XLU slots free).
    ones = jnp.ones((1, tile_rows), jnp.float32)
    sum_ref[...] += jnp.dot(ones, x, preferred_element_type=jnp.float32)
    sq_ref[...] += jnp.dot(ones, x * x, preferred_element_type=jnp.float32)

    @pl.when(i == n_tiles - 1)
    def _finalize():
        inv_r = jnp.float32(1.0 / rows)
        mean = sum_ref[...] * inv_r                                   # (1, Hp)
        var = jnp.maximum(sq_ref[...] * inv_r - mean * mean, 0.0)     # biased
        inv_std = jax.lax.rsqrt(var + jnp.float32(eps))
        scale = gamma_ref[...] * inv_std
        scale_ref[...] = scale
        shift_ref[...] = beta_ref[...] - mean * scale


def _normalize_kernel(x_ref, scale_ref, shift_ref, o_ref):
    """Pass 2: streaming fused multiply-add  y = x * scale + shift."""
    x = x_ref[...].astype(jnp.float32)
    o_ref[...] = (x * scale_ref[...] + shift_ref[...]).astype(o_ref.dtype)


def _choose_row_tile(rows, hp, budget_bytes=8 * 1024 * 1024):
    """Largest row tile (multiple of 8, <=1024) fitting a conservative VMEM budget.

    Budget: double-buffered input + output f32 tiles = 4 * TR * Hp * 4 bytes,
    which stays safely under the scoped VMEM defaults on v5e/v6e/v7x.
    """
    per_row_bytes = 4 * hp * 4
    tr = budget_bytes // per_row_bytes
    tr = max(8, min(1024, (tr // 8) * 8))
    tr = min(tr, ((rows + 7) // 8) * 8)  # no point tiling past the data
    return int(tr)


def node_bn(x, gamma, beta, eps=EPS):
    """x: (B, N, H); gamma, beta: (H,) float-ish. Returns (B, N, H)."""
    B, N, H = x.shape
    if N == 1:
        # PyTorch module returns the input unchanged when there is one node.
        return x

    R = B * N
    x2 = x.reshape(R, H)

    # Lane-dense channel axis (no-op when H is already a multiple of 128).
    Hp = ((H + 127) // 128) * 128
    gamma_f = gamma.astype(jnp.float32)
    beta_f = beta.astype(jnp.float32)
    if Hp != H:
        x2 = jnp.pad(x2, ((0, 0), (0, Hp - H)))
        gamma_f = jnp.pad(gamma_f, (0, Hp - H))
        beta_f = jnp.pad(beta_f, (0, Hp - H))
    g2 = gamma_f.reshape(1, Hp)
    b2 = beta_f.reshape(1, Hp)

    TR = _choose_row_tile(R, Hp)
    num_tiles = pl.cdiv(R, TR)

    # -------- Pass 1: per-channel statistics -> (scale, shift) --------
    scale, shift = pl.pallas_call(
        functools.partial(_stats_kernel, rows=R, tile_rows=TR, eps=eps),
        out_shape=(jax.ShapeDtypeStruct((1, Hp), jnp.float32),
                   jax.ShapeDtypeStruct((1, Hp), jnp.float32)),
        grid=(num_tiles,),
        in_specs=[
            pl.BlockSpec((TR, Hp), lambda i: (i, 0)),
            pl.BlockSpec((1, Hp), lambda i: (0, 0)),   # gamma: DMA'd once
            pl.BlockSpec((1, Hp), lambda i: (0, 0)),   # beta:  DMA'd once
        ],
        out_specs=(
            pl.BlockSpec((1, Hp), lambda i: (0, 0)),   # resident accumulator out
            pl.BlockSpec((1, Hp), lambda i: (0, 0)),
        ),
        scratch_shapes=[
            pltpu.VMEM((1, Hp), jnp.float32),  # running sum
            pltpu.VMEM((1, Hp), jnp.float32),  # running sum of squares
        ],
        compiler_params=pltpu.CompilerParams(
            dimension_semantics=("arbitrary",)),
    )(x2, g2, b2)

    # -------- Pass 2: streaming normalize (parallel over row tiles) --------
    out = pl.pallas_call(
        _normalize_kernel,
        out_shape=jax.ShapeDtypeStruct((R, Hp), x.dtype),
        grid=(num_tiles,),
        in_specs=[
            pl.BlockSpec((TR, Hp), lambda i: (i, 0)),
            pl.BlockSpec((1, Hp), lambda i: (0, 0)),
            pl.BlockSpec((1, Hp), lambda i: (0, 0)),
        ],
        out_specs=pl.BlockSpec((TR, Hp), lambda i: (i, 0)),
        compiler_params=pltpu.CompilerParams(
            dimension_semantics=("parallel",)),
    )(x2, scale, shift)

    if Hp != H:
        out = out[:, :H]
    return out.reshape(B, N, H)


def _reference(x, gamma, beta, eps=EPS):
    xf = x.astype(jnp.float32)
    mean = jnp.mean(xf, axis=(0, 1), keepdims=True)
    var = jnp.mean((xf - mean) ** 2, axis=(0, 1), keepdims=True)
    y = (xf - mean) * jax.lax.rsqrt(var + eps) * gamma.astype(jnp.float32) \
        + beta.astype(jnp.float32)
    return y.astype(x.dtype)


if __name__ == "__main__":
    key = jax.random.PRNGKey(0)
    B, N, H = 2, 8, 32  # batch, num_nodes, hidden_dim

    x = jax.random.normal(key, (B, N, H), dtype=jnp.float32)

    # Deterministic BatchNorm1d parameter init (PyTorch defaults):
    # weight (gamma) = 1, bias (beta) = 0.
    gamma = jnp.ones((H,), dtype=jnp.float32)
    beta = jnp.zeros((H,), dtype=jnp.float32)

    y = jax.block_until_ready(node_bn(x, gamma, beta))
    y_ref = _reference(x, gamma, beta)
    assert y.shape == (B, N, H)
    assert jnp.allclose(y, y_ref, atol=1e-5, rtol=1e-5), "mismatch vs reference"

    # Non-trivial gamma/beta and a row count that is not a multiple of the tile
    # quantum exercises the masking / padding paths.
    k1, k2, k3 = jax.random.split(key, 3)
    B2, N2, H2 = 3, 5, 32
    x_b = jax.random.normal(k1, (B2, N2, H2), dtype=jnp.float32)
    gamma_b = jax.random.normal(k2, (H2,), dtype=jnp.float32)
    beta_b = jax.random.normal(k3, (H2,), dtype=jnp.float32)
    y_b = jax.block_until_ready(node_bn(x_b, gamma_b, beta_b))
    assert jnp.allclose(y_b, _reference(x_b, gamma_b, beta_b),
                        atol=1e-5, rtol=1e-5), "mismatch vs reference (affine)"

    # Also exercise the N == 1 early-return path.
    x1 = jax.random.normal(key, (B, 1, H), dtype=jnp.float32)
    y1 = jax.block_until_ready(node_bn(x1, gamma, beta))
    assert jnp.array_equal(y1, x1)

    print("KERNEL_OK")
</pallas_src>

<mosaic_0001>
module attributes {stable_mosaic.version = 11 : i64} {
  func.func @_stats_kernel(%arg0: i32, %arg1: memref<16x128xf32, #tpu.memory_space<vmem>>, %arg2: memref<1x128xf32, #tpu.memory_space<vmem>>, %arg3: memref<1x128xf32, #tpu.memory_space<vmem>>, %arg4: memref<1x128xf32, #tpu.memory_space<vmem>>, %arg5: memref<1x128xf32, #tpu.memory_space<vmem>>, %arg6: memref<1x128xf32, #tpu.memory_space<vmem>>, %arg7: memref<1x128xf32, #tpu.memory_space<vmem>>) attributes {dimension_semantics = [#tpu.dimension_semantics<arbitrary>], iteration_bounds = array<i64: 1>, scalar_prefetch = 0 : i64, scratch_operands = 2 : i64, tpu.core_type = #tpu.core_type<tc>, window_params = [{transform_indices = @transform_0, window_bounds = array<i64: 16, 128>}, {pipeline_mode = #tpu.pipeline_mode<synchronous>, transform_indices = @transform_1, window_bounds = array<i64: 1, 128>}, {pipeline_mode = #tpu.pipeline_mode<synchronous>, transform_indices = @transform_2, window_bounds = array<i64: 1, 128>}, {pipeline_mode = #tpu.pipeline_mode<synchronous>, transform_indices = @transform_3, window_bounds = array<i64: 1, 128>}, {pipeline_mode = #tpu.pipeline_mode<synchronous>, transform_indices = @transform_4, window_bounds = array<i64: 1, 128>}]} {
    %c0_i32 = arith.constant 0 : i32
    %0 = arith.cmpi eq, %arg0, %c0_i32 : i32
    %1 = arith.extui %0 : i1 to i32
    %c0_i32_0 = arith.constant 0 : i32
    %2 = arith.cmpi ne, %1, %c0_i32_0 : i32
    scf.if %2 {
      %cst_14 = arith.constant 0.000000e+00 : f32
      %17 = vector.broadcast %cst_14 : f32 to vector<1x128xf32>
      %c0_15 = arith.constant 0 : index
      %c0_16 = arith.constant 0 : index
      %18 = vector.load %arg6[%c0_15, %c0_16] : memref<1x128xf32, #tpu.memory_space<vmem>>, vector<1x128xf32>
      tpu.vector_store %arg6[%c0_15, %c0_16], %17 {strides = array<i32>} : memref<1x128xf32, #tpu.memory_space<vmem>>, vector<1x128xf32>,
      %cst_17 = arith.constant 0.000000e+00 : f32
      %19 = vector.broadcast %cst_17 : f32 to vector<1x128xf32>
      %c0_18 = arith.constant 0 : index
      %c0_19 = arith.constant 0 : index
      %20 = vector.load %arg7[%c0_18, %c0_19] : memref<1x128xf32, #tpu.memory_space<vmem>>, vector<1x128xf32>
      tpu.vector_store %arg7[%c0_18, %c0_19], %19 {strides = array<i32>} : memref<1x128xf32, #tpu.memory_space<vmem>>, vector<1x128xf32>,
    } else {
    }
    %c0 = arith.constant 0 : index
    %c0_1 = arith.constant 0 : index
    %3 = vector.load %arg1[%c0, %c0_1] : memref<16x128xf32, #tpu.memory_space<vmem>>, vector<16x128xf32>
    %cst = arith.constant 1.000000e+00 : f32
    %4 = vector.broadcast %cst : f32 to vector<1x16xf32>
    %c0_2 = arith.constant 0 : index
    %c0_3 = arith.constant 0 : index
    %5 = vector.load %arg6[%c0_2, %c0_3] : memref<1x128xf32, #tpu.memory_space<vmem>>, vector<1x128xf32>
    %cst_4 = arith.constant dense<0.000000e+00> : vector<1x128xf32>
    %6 = tpu.matmul %4, %3, %cst_4 {dimension_numbers = #tpu.dot_dimension_numbers<[1], [0], [0], [1], [0, 0, 1, 1], [], []>} : vector<1x16xf32>, vector<16x128xf32>, vector<1x128xf32> -> vector<1x128xf32>
    %7 = arith.addf %5, %6 : vector<1x128xf32>
    %c0_5 = arith.constant 0 : index
    %c0_6 = arith.constant 0 : index
    %8 = vector.load %arg6[%c0_5, %c0_6] : memref<1x128xf32, #tpu.memory_space<vmem>>, vector<1x128xf32>
    tpu.vector_store %arg6[%c0_5, %c0_6], %7 {strides = array<i32>} : memref<1x128xf32, #tpu.memory_space<vmem>>, vector<1x128xf32>,
    %c0_7 = arith.constant 0 : index
    %c0_8 = arith.constant 0 : index
    %9 = vector.load %arg7[%c0_7, %c0_8] : memref<1x128xf32, #tpu.memory_space<vmem>>, vector<1x128xf32>
    %10 = arith.mulf %3, %3 : vector<16x128xf32>
    %cst_9 = arith.constant dense<0.000000e+00> : vector<1x128xf32>
    %11 = tpu.matmul %4, %10, %cst_9 {dimension_numbers = #tpu.dot_dimension_numbers<[1], [0], [0], [1], [0, 0, 1, 1], [], []>} : vector<1x16xf32>, vector<16x128xf32>, vector<1x128xf32> -> vector<1x128xf32>
    %12 = arith.addf %9, %11 : vector<1x128xf32>
    %c0_10 = arith.constant 0 : index
    %c0_11 = arith.constant 0 : index
    %13 = vector.load %arg7[%c0_10, %c0_11] : memref<1x128xf32, #tpu.memory_space<vmem>>, vector<1x128xf32>
    tpu.vector_store %arg7[%c0_10, %c0_11], %12 {strides = array<i32>} : memref<1x128xf32, #tpu.memory_space<vmem>>, vector<1x128xf32>,
    %c0_i32_12 = arith.constant 0 : i32
    %14 = arith.cmpi eq, %arg0, %c0_i32_12 : i32
    %15 = arith.extui %14 : i1 to i32
    %c0_i32_13 = arith.constant 0 : i32
    %16 = arith.cmpi ne, %15, %c0_i32_13 : i32
    scf.if %16 {
      %c0_14 = arith.constant 0 : index
      %c0_15 = arith.constant 0 : index
      %17 = vector.load %arg6[%c0_14, %c0_15] : memref<1x128xf32, #tpu.memory_space<vmem>>, vector<1x128xf32>
      %cst_16 = arith.constant 6.250000e-02 : f32
      %18 = vector.broadcast %cst_16 : f32 to vector<1x128xf32>
      %19 = arith.mulf %17, %18 : vector<1x128xf32>
      %c0_17 = arith.constant 0 : index
      %c0_18 = arith.constant 0 : index
      %20 = vector.load %arg7[%c0_17, %c0_18] : memref<1x128xf32, #tpu.memory_space<vmem>>, vector<1x128xf32>
      %cst_19 = arith.constant 6.250000e-02 : f32
      %21 = vector.broadcast %cst_19 : f32 to vector<1x128xf32>
      %22 = arith.mulf %20, %21 : vector<1x128xf32>
      %23 = arith.mulf %19, %19 : vector<1x128xf32>
      %24 = arith.subf %22, %23 : vector<1x128xf32>
      %cst_20 = arith.constant 0.000000e+00 : f32
      %25 = vector.broadcast %cst_20 : f32 to vector<1x128xf32>
      %26 = arith.maximumf %24, %25 : vector<1x128xf32>
      %cst_21 = arith.constant 9.99999974E-6 : f32
      %27 = vector.broadcast %cst_21 : f32 to vector<1x128xf32>
      %28 = arith.addf %26, %27 : vector<1x128xf32>
      %29 = math.rsqrt %28 : vector<1x128xf32>
      %c0_22 = arith.constant 0 : index
      %c0_23 = arith.constant 0 : index
      %30 = vector.load %arg2[%c0_22, %c0_23] : memref<1x128xf32, #tpu.memory_space<vmem>>, vector<1x128xf32>
      %31 = arith.mulf %30, %29 : vector<1x128xf32>
      %c0_24 = arith.constant 0 : index
      %c0_25 = arith.constant 0 : index
      %32 = vector.load %arg4[%c0_24, %c0_25] : memref<1x128xf32, #tpu.memory_space<vmem>>, vector<1x128xf32>
      tpu.vector_store %arg4[%c0_24, %c0_25], %31 {strides = array<i32>} : memref<1x128xf32, #tpu.memory_space<vmem>>, vector<1x128xf32>,
      %c0_26 = arith.constant 0 : index
      %c0_27 = arith.constant 0 : index
      %33 = vector.load %arg3[%c0_26, %c0_27] : memref<1x128xf32, #tpu.memory_space<vmem>>, vector<1x128xf32>
      %34 = arith.mulf %19, %31 : vector<1x128xf32>
      %35 = arith.subf %33, %34 : vector<1x128xf32>
      %c0_28 = arith.constant 0 : index
      %c0_29 = arith.constant 0 : index
      %36 = vector.load %arg5[%c0_28, %c0_29] : memref<1x128xf32, #tpu.memory_space<vmem>>, vector<1x128xf32>
      tpu.vector_store %arg5[%c0_28, %c0_29], %35 {strides = array<i32>} : memref<1x128xf32, #tpu.memory_space<vmem>>, vector<1x128xf32>,
    } else {
    }
    return
  }
  func.func @transform_0(%arg0: i32) -> (i32, i32) {
    %c0_i32 = arith.constant 0 : i32
    %c0_i32_0 = arith.constant 0 : i32
    return %arg0, %c0_i32 : i32, i32
  }
  func.func @transform_1(%arg0: i32) -> (i32, i32) {
    %c0_i32 = arith.constant 0 : i32
    %c0_i32_0 = arith.constant 0 : i32
    %c0_i32_1 = arith.constant 0 : i32
    return %c0_i32, %c0_i32_0 : i32, i32
  }
  func.func @transform_2(%arg0: i32) -> (i32, i32) {
    %c0_i32 = arith.constant 0 : i32
    %c0_i32_0 = arith.constant 0 : i32
    %c0_i32_1 = arith.constant 0 : i32
    return %c0_i32, %c0_i32_0 : i32, i32
  }
  func.func @transform_3(%arg0: i32) -> (i32, i32) {
    %c0_i32 = arith.constant 0 : i32
    %c0_i32_0 = arith.constant 0 : i32
    %c0_i32_1 = arith.constant 0 : i32
    return %c0_i32, %c0_i32_0 : i32, i32
  }
  func.func @transform_4(%arg0: i32) -> (i32, i32) {
    %c0_i32 = arith.constant 0 : i32
    %c0_i32_0 = arith.constant 0 : i32
    %c0_i32_1 = arith.constant 0 : i32
    return %c0_i32, %c0_i32_0 : i32, i32
  }
}

</mosaic_0001>

<bundles_post_ra>
// kernel: tpu_custom_call.1
= control target key start
LH: loop header
LB: loop body
LE: loop exit
PB: predicated region body
PF: predicated region fallthrough
CT: control target
= control target key end

     0   :  { %10 = vsyncpa [#allocation5], 0  ;;  %s427_s0 = inlined_call_operand.hbm [shape: f32[16,128], index: 0, kind: input, shape index: {}]   ;;  %s428_s1 = inlined_call_operand.vmem [shape: f32[1,128], index: 1, kind: input, shape index: {}]   ;;  %s429_s2 = inlined_call_operand.vmem [shape: f32[1,128], index: 2, kind: input, shape index: {}]   ;;  %s430_s3 = inlined_call_operand.hbm [shape: f32[1,128], index: 3, kind: output, shape index: {0}]   ;;  %s431_s4 = inlined_call_operand.hbm [shape: f32[1,128], index: 4, kind: output, shape index: {1}]  }
   0x1   :  { %11 = vsyncpa [#allocation6], 0 }
   0x2   :  { %12 = vsyncpa [#allocation9], 0  ;;  %s351_s15 = smov [#allocation4]   ;;  %s279_s19 = scalar_lea.hbm %s427_s0, 256 }
   0x3   :  { %s18_s16 = sshll.u32 %s351_s15, 4  ;;  %p280_p0 = scmp.ne.s32.totalorder %s427_s0, %s279_s19  ;;  %s19_s16 = int_to_ptr.vmem [resolvable:$true] %s18_s16 }
   0x4   :  { %p283_p1 = scmp.lt.u32.totalorder %s279_s19, %s427_s0 }
   0x6   :  { %p285_p2 = pnand %p283_p1, %p280_p0 }
   0x8   :  { %288 = shalt.err (!%p285_p2)
}
   0x9   :  { %s289_s24 = scalar_lea.vmem %s19_s16, 256  ;;  %p294_p4 = scmp.lt.s32.totalorder %s19_s16, %s19_s16 }
   0xa   :  { %p290_p3 = scmp.ne.s32.totalorder %s19_s16, %s289_s24  ;;  %p295_p5 = scmp.lt.s32.totalorder %s289_s24, %s289_s24 }
   0xc   :  { %p296_p6 = por %p295_p5, %p294_p4 }
   0xe   :  { %p297_p7 = pnand %p296_p6, %p290_p3 }
  0x10   :  { %300 = shalt.err (!%p297_p7)
}
  0x11   :  { %s352_s25 = smov 128   ;;  %s353_s26 = smov 8  }
  0x12   :  { %24 = dma.hbm_to_vmem [thread:$0]  %s427_s0, 256, %s19_s16, [#allocation5], %s352_s25, %s352_s25, %s353_s26  }
  0x13   :  { %345 = dma.done.wait [#allocation5], 256  }
  0x14   :  { %346 = vsyncadd [#allocation5], 4294967040  ;;  %v354_v0 = vmov 0.0|0.0   ;;  %v355_v1 = vmov 0.0   ;;  %vm356_vm0 = vmmov 0   ;;  %v38_v2 = vld [vmem:[#allocation4] sm:$0xff] }
  0x15   :  { %262 = vmatprep.subr.bf16.mxu0 %v354_v0  ;;  %265 = vmatprep.subr.bf16.mxu1 %v354_v0  ;;  %36 = vst [vmem:[#allocation2] sm:$0x1] %v355_v1  ;;  %37 = vst [vmem:[#allocation3] sm:$0x1] %v355_v1  ;;  %v39_v3 = vld [vmem:[#allocation4 + $0x8] sm:$0xff]  ;;  %v118_v5 = vmul.f32 %v38_v2, %v38_v2  ;;  %vm41_vm1 = vcmask 130048  }
  0x16   :  { %252 = vmatprep.mubr.msk.f32.mxu0 %vm356_vm0, %v355_v1  ;;  %259 = vmatprep.mubr.msk.f32.mxu1 %vm356_vm0, %v355_v1  ;;  %v263_v4 = vpack.c.bf16 %v39_v3, %v38_v2  ;;  %v119_v6 = vmul.f32 %v39_v3, %v39_v3  ;;  %v357_v8 = vmov 1.0   ;;  %v204_v25 = vld [vmem:[%s428_s1] sm:$0x1]  ;;  %s358_s30 = smov [#allocation7]   ;;  %s359_s8 = smov [#allocation8]  }
  0x17   :  { %s217_s5 = sshll.u32 %s358_s30, 4  ;;  %v207_v28 = vld [vmem:[%s429_s2] sm:$0x1]  ;;  %s227_s9 = sshll.u32 %s359_s8, 4  ;;  %s218_s5 = int_to_ptr.vmem [resolvable:$true] %s217_s5  ;;  %s228_s9 = int_to_ptr.vmem [resolvable:$true] %s227_s9 }
  0x18   :  { %264 = vmatpush3.bf16.msra.mxu0 %v263_v4  ;;  %v266_v7 = vpack.c.bf16 %v119_v6, %v118_v5  ;;  %s301_s10 = scalar_lea.vmem %s218_s5, 16  ;;  %s305_s11 = scalar_lea.vmem %s218_s5, 32 }
  0x19   :  { %p302_p8 = scmp.ne.s32.totalorder %s218_s5, %s301_s10  ;;  %p306_p9 = scmp.lt.s32.totalorder %s218_s5, %s218_s5 }
  0x1a   :  { %267 = vmatpush3.bf16.msra.mxu1 %v266_v7  ;;  %p307_p10 = scmp.lt.s32.totalorder %s305_s11, %s301_s10 }
  0x1b   :  { %253 = vmatmul.mubr.msk.f32.vlgmr.msra.gmra.mrb[0].mxu0 %vm41_vm1, %v357_v8 }
  0x1c   :  { %v40_v9 = vld [vmem:[#allocation2] sm:$0x1]  ;;  %v117_v11 = vld [vmem:[#allocation3] sm:$0x1]  ;;  %p308_p11 = por %p307_p10, %p306_p9 }
  0x1d   :  { %260 = vmatmul.mubr.msk.f32.vlgmr.msra.gmra.mrb[0].mxu1 %vm41_vm1, %v357_v8 }
  0x1e   :  { %p309_p12 = pnand %p308_p11, %p302_p8 }
  0xee   :  { %v111_v10 = vpop.f32.mrb[0].mxu0 }
  0xef   :  { %v115_v12 = vadd.f32 %v111_v10, %v40_v9  ;;  %v254_v13 = vpop.f32.mrb[1].mxu0 }
  0xf0   :  { %v186_v14 = vpop.f32.mrb[0].mxu1 }
  0xf1   :  { %116 = vst [vmem:[#allocation2] sm:$0x1] %v115_v12  ;;  %v190_v15 = vadd.f32 %v186_v14, %v117_v11  ;;  %v261_v16 = vpop.f32.mrb[1].mxu1 }
  0xf3   :  { %191 = vst [vmem:[#allocation3] sm:$0x1] %v190_v15 }
  0xf8   :  { %v195_v17 = vld [vmem:[#allocation2] sm:$0x1] }
  0xf9   :  { %v196_v18 = vmul.f32 0.0625, %v195_v17 }
  0xfa   :  { %v197_v19 = vld [vmem:[#allocation3] sm:$0x1] }
  0xfb   :  { %v198_v20 = vmul.f32 0.0625, %v197_v19  ;;  %v199_v21 = vmul.f32 %v196_v18, %v196_v18 }
  0xfd   :  { %v200_v22 = vsub.f32 %v198_v20, %v199_v21 }
  0xff   :  { %v201_v23 = vmax.f32 %v200_v22, 0.0 }
 0x101   :  { %v202_v24 = vadd.f32 1e-05, %v201_v23 }
 0x103   :  { %277 = vrsqrt.f32 %v202_v24 }
 0x10d   :  { %v278_v26 = vpop.eup %277 }
 0x10e   :  { %v205_v27 = vmul.f32 %v278_v26, %v204_v25 }
 0x110   :  { %206 = vst [vmem:[#allocation7] sm:$0x1] %v205_v27  ;;  %v208_v29 = vmul.f32 %v205_v27, %v196_v18 }
 0x111   :  { %312 = shalt.err (!%p309_p12)
}
 0x112   :  { %s313_s13 = scalar_lea.hbm %s430_s3, 16 }
 0x113   :  { %p314_p13 = scmp.ne.s32.totalorder %s430_s3, %s313_s13  ;;  %p317_p0 = scmp.lt.u32.totalorder %s313_s13, %s430_s3 }
 0x115   :  { %p319_p1 = pnand %p317_p0, %p314_p13 }
 0x117   :  { %322 = shalt.err (!%p319_p1)
}
 0x118   :  { %220 = dma.vmem_to_hbm [thread:$0]  %s218_s5, 16, %s430_s3, [#allocation6]   ;;  %v209_v30 = vsub.f32 %v207_v28, %v208_v29 }
 0x119   :  { %s323_s19 = scalar_lea.vmem %s228_s9, 16  ;;  %s327_s20 = scalar_lea.vmem %s228_s9, 32 }
 0x11a   :  { %210 = vst [vmem:[#allocation8] sm:$0x1] %v209_v30  ;;  %p324_p2 = scmp.ne.s32.totalorder %s228_s9, %s323_s19  ;;  %p328_p3 = scmp.lt.s32.totalorder %s228_s9, %s228_s9 }
 0x11b   :  { %p329_p4 = scmp.lt.s32.totalorder %s327_s20, %s323_s19 }
 0x11d   :  { %p330_p5 = por %p329_p4, %p328_p3 }
 0x11f   :  { %p331_p6 = pnand %p330_p5, %p324_p2 }
 0x121   :  { %334 = shalt.err (!%p331_p6)
}
 0x122   :  { %s335_s23 = scalar_lea.hbm %s431_s4, 16 }
 0x123   :  { %p336_p7 = scmp.ne.s32.totalorder %s431_s4, %s335_s23  ;;  %p339_p8 = scmp.lt.u32.totalorder %s335_s23, %s431_s4 }
 0x125   :  { %p341_p9 = pnand %p339_p8, %p336_p7 }
 0x127   :  { %344 = shalt.err (!%p341_p9)
}
 0x128   :  { %230 = dma.vmem_to_hbm [thread:$0]  %s228_s9, 16, %s431_s4, [#allocation9]  }
 0x129   :  { %347 = dma.done.wait [#allocation6], 16  }
 0x12a   :  { %348 = vsyncadd [#allocation6], 4294967280 }
 0x12b   :  { %349 = dma.done.wait [#allocation9], 16  }
 0x12c   :  { %350 = vsyncadd [#allocation9], 4294967280 }
 0x12d   :  { %237 = vsyncpa [#allocation5], 1 }
 0x12e   :  { %238 = vsyncpa [#allocation6], 1 }
 0x12f   :  { %239 = vsyncpa [#allocation9], 1 }

</bundles_post_ra>
